<compile_context>
chip_gen: v7x
topology: tpu7x:2x2x1
jax: 0.10.0
libtpu: 0.0.40
codegen_flags: <defaults>
</compile_context>

<pallas_src>
import jax
import jax.numpy as jnp
from jax.experimental import pallas as pl
from jax.experimental.pallas import tpu as pltpu

_LANES = 128


def _squared_relu_kernel(x_ref, o_ref):
    x = x_ref[...]
    r = jnp.maximum(x, 0)   # ReLU on the VPU (weak-typed 0 keeps dtype)
    o_ref[...] = r * r      # square; stays in the input dtype


def _squared_relu_jnp(x):
    r = jnp.maximum(x, 0)
    return r * r


def squared_relu_ref(x: jax.Array) -> jax.Array:
    """Pure-JAX reference matching torch.square(F.relu(x))."""
    return jnp.square(jnp.maximum(x, 0))


def _choose_width(n_aligned: int, shape, max_width: int) -> int:
    """Pick a lane-dense slab width (multiple of 128) dividing n_aligned."""
    # Fast path: product of trailing dims is already a multiple of 128 and
    # divides the aligned element count -> use it directly (keeps vst unmasked
    # and avoids degenerate tall-skinny 128-wide slabs).
    tw = 1
    for d in reversed(shape):
        tw *= d
        if tw % _LANES == 0:
            break
    if tw % _LANES == 0 and _LANES <= tw <= max_width and n_aligned % tw == 0:
        return tw
    # Fallback: widest power-of-two multiple of 128 that divides n_aligned.
    w = _LANES
    while w * 2 <= max_width and n_aligned % (w * 2) == 0:
        w *= 2
    return w


def squared_relu(x: jax.Array,
                 *,
                 max_width: int = 4096,
                 target_block_bytes: int = 8 * 1024 * 1024,
                 min_split_bytes: int = 1024 * 1024) -> jax.Array:
    """Elementwise relu(x)**2 via Pallas. Any shape, float dtypes intended."""
    orig_shape = x.shape
    dtype = x.dtype
    n = x.size
    if n == 0:
        return x

    x_flat = jnp.reshape(x, (-1,))          # free (no copy) for contiguous input
    n_bulk = (n // _LANES) * _LANES         # 128-aligned bulk handled by Pallas
    tail = n - n_bulk

    if n_bulk == 0:
        # Tiny (<128 elements): not worth a kernel launch.
        return jnp.reshape(_squared_relu_jnp(x_flat), orig_shape)

    bulk = x_flat[:n_bulk] if tail else x_flat
    w = _choose_width(n_bulk, orig_shape if not tail else (n_bulk,), max_width)
    rows = n_bulk // w
    x2d = jnp.reshape(bulk, (rows, w))

    # Rows per block: ~target_block_bytes, multiple of 32 sublanes so
    # f32/bf16/int8 all satisfy the (8,128)/(16,128)/(32,128) tiling rule.
    itemsize = jnp.dtype(dtype).itemsize
    tr = max(32, (target_block_bytes // (w * itemsize)) // 32 * 32)
    if tr >= rows:
        if rows >= 64 and rows * w * itemsize >= min_split_bytes:
            # Mid-size tensor fitting one target block: still split into >=2
            # grid steps so both v7x TensorCores engage on the parallel axis.
            tr = min(rows, (-(-rows // 2) + 31) // 32 * 32)
        else:
            tr = rows           # whole-array block (full-dim blocks are exempt)
    grid = (pl.cdiv(rows, tr),)

    out2d = pl.pallas_call(
        _squared_relu_kernel,
        out_shape=jax.ShapeDtypeStruct((rows, w), dtype),
        grid_spec=pltpu.PrefetchScalarGridSpec(
            num_scalar_prefetch=0,
            grid=grid,
            in_specs=[pl.BlockSpec((tr, w), lambda i: (i, 0))],
            out_specs=pl.BlockSpec((tr, w), lambda i: (i, 0)),
        ),
        compiler_params=pltpu.CompilerParams(
            dimension_semantics=("parallel",),
            vmem_limit_bytes=48 * 1024 * 1024,
        ),
    )(x2d)

    out_flat = jnp.reshape(out2d, (-1,))
    if tail:
        # Rare unaligned path: handle the <=127-element tail with plain jnp
        # instead of a whole-array pad + output slice (saves 2 HBM passes).
        out_flat = jnp.concatenate([out_flat, _squared_relu_jnp(x_flat[n_bulk:])])
    return jnp.reshape(out_flat, orig_shape)


if __name__ == "__main__":
    key = jax.random.PRNGKey(0)

    # Primary input: NCHW, same convention as the PyTorch module.
    x = jax.random.normal(key, (2, 4, 16, 16), dtype=jnp.float32)
    out = jax.block_until_ready(squared_relu(x))
    ref = squared_relu_ref(x)
    assert out.shape == x.shape and out.dtype == x.dtype
    assert jnp.allclose(out, ref, atol=1e-6, rtol=1e-6)

    # Extra coverage: non-128-aligned element count (tail path).
    k1, k2 = jax.random.split(key)
    x_tail = jax.random.normal(k1, (2, 3, 130), dtype=jnp.float32)
    out_tail = jax.block_until_ready(squared_relu(x_tail))
    assert jnp.allclose(out_tail, squared_relu_ref(x_tail), atol=1e-6, rtol=1e-6)

    # Extra coverage: mid-size tensor -> 2 grid steps (megacore split) + bf16.
    x_mid = jax.random.normal(k2, (64, 4096), dtype=jnp.bfloat16)
    out_mid = jax.block_until_ready(squared_relu(x_mid))
    assert out_mid.dtype == jnp.bfloat16
    assert jnp.allclose(out_mid.astype(jnp.float32),
                        squared_relu_ref(x_mid).astype(jnp.float32),
                        atol=1e-2, rtol=1e-2)

    print("KERNEL_OK")
</pallas_src>

<mosaic_0001>
module attributes {stable_mosaic.version = 11 : i64} {
  func.func @_squared_relu_kernel(%arg0: i32, %arg1: memref<8x256xf32, #tpu.memory_space<vmem>>, %arg2: memref<8x256xf32, #tpu.memory_space<vmem>>) attributes {dimension_semantics = [#tpu.dimension_semantics<parallel>], iteration_bounds = array<i64: 1>, scalar_prefetch = 0 : i64, scratch_operands = 0 : i64, tpu.core_type = #tpu.core_type<tc>, window_params = [{transform_indices = @transform_0, window_bounds = array<i64: 8, 256>}, {transform_indices = @transform_1, window_bounds = array<i64: 8, 256>}]} {
    %c0 = arith.constant 0 : index
    %c0_0 = arith.constant 0 : index
    %0 = vector.load %arg1[%c0, %c0_0] : memref<8x256xf32, #tpu.memory_space<vmem>>, vector<8x256xf32>
    %cst = arith.constant 0.000000e+00 : f32
    %1 = vector.broadcast %cst : f32 to vector<8x256xf32>
    %2 = arith.maximumf %0, %1 : vector<8x256xf32>
    %3 = arith.mulf %2, %2 : vector<8x256xf32>
    %c0_1 = arith.constant 0 : index
    %c0_2 = arith.constant 0 : index
    %4 = vector.load %arg2[%c0_1, %c0_2] : memref<8x256xf32, #tpu.memory_space<vmem>>, vector<8x256xf32>
    tpu.vector_store %arg2[%c0_1, %c0_2], %3 {strides = array<i32>} : memref<8x256xf32, #tpu.memory_space<vmem>>, vector<8x256xf32>,
    return
  }
  func.func @transform_0(%arg0: i32) -> (i32, i32) {
    %c0_i32 = arith.constant 0 : i32
    %c0_i32_0 = arith.constant 0 : i32
    return %arg0, %c0_i32 : i32, i32
  }
  func.func @transform_1(%arg0: i32) -> (i32, i32) {
    %c0_i32 = arith.constant 0 : i32
    %c0_i32_0 = arith.constant 0 : i32
    return %arg0, %c0_i32 : i32, i32
  }
}

</mosaic_0001>

<bundles_post_ra>
// kernel: tpu_custom_call.1
= control target key start
LH: loop header
LB: loop body
LE: loop exit
PB: predicated region body
PF: predicated region fallthrough
CT: control target
= control target key end

     0   :  { %6 = vsyncpa [#allocation3], 0  ;;  %s130_s0 = inlined_call_operand.hbm [shape: f32[8,256], index: 0, kind: input, shape index: {}]   ;;  %s131_s1 = inlined_call_operand.hbm [shape: f32[8,256], index: 1, kind: output, shape index: {}]  }
   0x1   :  { %7 = vsyncpa [#allocation4], 0  ;;  %s94_s6 = smov [#allocation2]   ;;  %s46_s10 = scalar_lea.hbm %s130_s0, 256 }
   0x2   :  { %s14_s7 = sshll.u32 %s94_s6, 4  ;;  %p47_p0 = scmp.ne.s32.totalorder %s130_s0, %s46_s10  ;;  %s15_s7 = int_to_ptr.vmem [resolvable:$true] %s14_s7 }
   0x3   :  { %p50_p1 = scmp.lt.u32.totalorder %s46_s10, %s130_s0 }
   0x5   :  { %p52_p2 = pnand %p50_p1, %p47_p0 }
   0x7   :  { %55 = shalt.err (!%p52_p2)
}
   0x8   :  { %s56_s15 = scalar_lea.vmem %s15_s7, 256  ;;  %p61_p4 = scmp.lt.s32.totalorder %s15_s7, %s15_s7 }
   0x9   :  { %p57_p3 = scmp.ne.s32.totalorder %s15_s7, %s56_s15  ;;  %p62_p5 = scmp.lt.s32.totalorder %s56_s15, %s56_s15 }
   0xb   :  { %p63_p6 = por %p62_p5, %p61_p4 }
   0xd   :  { %p64_p7 = pnand %p63_p6, %p57_p3 }
   0xf   :  { %67 = shalt.err (!%p64_p7)
}
  0x10   :  { %17 = dma.hbm_to_vmem [thread:$0]  %s130_s0, 256, %s15_s7, [#allocation3]  }
  0x11   :  { %90 = dma.done.wait [#allocation3], 256  }
  0x12   :  { %91 = vsyncadd [#allocation3], 4294967040  ;;  %v21_v0 = vld [vmem:[#allocation2] sm:$0xff]  ;;  %v22_v1 = vld [vmem:[#allocation2 + $0x8] sm:$0xff]  ;;  %s95_s18 = smov [#allocation5]  }
  0x13   :  { %s35_s19 = sshll.u32 %s95_s18, 4  ;;  %v23_v2 = vmax.f32 %v21_v0, 0.0  ;;  %v24_v3 = vmax.f32 %v22_v1, 0.0  ;;  %s36_s19 = int_to_ptr.vmem [resolvable:$true] %s35_s19 }
  0x14   :  { %s68_s20 = scalar_lea.vmem %s36_s19, 256  ;;  %p73_p9 = scmp.lt.s32.totalorder %s36_s19, %s36_s19 }
  0x15   :  { %v25_v4 = vmul.f32 %v23_v2, %v23_v2  ;;  %v26_v5 = vmul.f32 %v24_v3, %v24_v3  ;;  %p69_p8 = scmp.ne.s32.totalorder %s36_s19, %s68_s20  ;;  %p74_p10 = scmp.lt.s32.totalorder %s68_s20, %s68_s20 }
  0x17   :  { %27 = vst [vmem:[#allocation5] sm:$0xff] %v25_v4  ;;  %28 = vst [vmem:[#allocation5 + $0x8] sm:$0xff] %v26_v5  ;;  %p75_p11 = por %p74_p10, %p73_p9 }
  0x19   :  { %p76_p12 = pnand %p75_p11, %p69_p8 }
  0x1b   :  { %79 = shalt.err (!%p76_p12)
}
  0x1c   :  { %s80_s22 = scalar_lea.hbm %s131_s1, 256 }
  0x1d   :  { %p81_p13 = scmp.ne.s32.totalorder %s131_s1, %s80_s22  ;;  %p84_p0 = scmp.lt.u32.totalorder %s80_s22, %s131_s1 }
  0x1f   :  { %p86_p1 = pnand %p84_p0, %p81_p13 }
  0x21   :  { %89 = shalt.err (!%p86_p1)
}
  0x22   :  { %38 = dma.vmem_to_hbm [thread:$0]  %s36_s19, 256, %s131_s1, [#allocation4]  }
  0x23   :  { %92 = dma.done.wait [#allocation4], 256  }
  0x24   :  { %93 = vsyncadd [#allocation4], 4294967040 }
  0x25   :  { %42 = vsyncpa [#allocation3], 1 }
  0x26   :  { %43 = vsyncpa [#allocation4], 1 }

</bundles_post_ra>
